<compile_context>
chip_gen: v6e
topology: v6e:2x2x1
jax: 0.10.0
libtpu: 0.0.40
codegen_flags: <defaults>
</compile_context>

<pallas_src>
import functools

import jax
import jax.numpy as jnp
from jax.experimental import pallas as pl
from jax.experimental.pallas import tpu as pltpu

LANE = 128
SUBLANE = 8


def _round_up(x, m):
    return ((x + m - 1) // m) * m


def _focal_bce_kernel(logits_ref, targets_ref, partial_ref, *,
                      gamma, alpha, block_rows, tail_rows, num_tiles):
    """One (block_rows, 128) tile -> one (8, 128) lane-dense partial sum."""
    x = logits_ref[...].astype(jnp.float32)
    t = targets_ref[...].astype(jnp.float32)

    # One exp(-|x|) shared between the stable BCE term and the sigmoid (EUP).
    e = jnp.exp(-jnp.abs(x))                          # exp(-|x|) in (0, 1]
    # Numerically stable BCE-with-logits: max(x,0) - x*t + log1p(exp(-|x|)).
    bce = jnp.maximum(x, 0.0) - x * t + jnp.log1p(e)
    # sigmoid(x) without a second exp.  approx=True would move the divide to
    # the EUP (frees VALU, relevant on v7x) at ~1e-4 relative error; kept
    # exact here so the 1e-5 reference tolerance holds.
    inv = pl.reciprocal(1.0 + e, approx=False)
    prob = jnp.where(x >= 0.0, inv, e * inv)

    # Algebraic rewrites (fewer VALU ops; constants folded at trace time):
    #   1 - pt                      = prob + t - 2*prob*t
    #   alpha*t + (1-alpha)*(1-t)   = (1-alpha) + (2*alpha-1)*t
    one_minus_pt = prob + t - 2.0 * (prob * t)
    g = float(gamma)
    if g == 2.0:
        mod = one_minus_pt * one_minus_pt             # avoid pow -> exp(g*log)
    elif g == 1.0:
        mod = one_minus_pt
    elif g == 0.0:
        mod = jnp.ones_like(one_minus_pt)
    else:
        mod = one_minus_pt ** g
    a = float(alpha)
    alpha_w = (1.0 - a) + (2.0 * a - 1.0) * t

    focal = alpha_w * mod * bce

    def _reduce_store(f):
        # Sublane/lane-resident partial sum: pure VPU adds across the
        # (block_rows/8) vreg tiles; no cross-lane reduce, no serial scalar
        # accumulator across grid steps.
        partial_ref[...] = jnp.sum(
            f.reshape(block_rows // SUBLANE, SUBLANE, LANE), axis=0)

    if tail_rows == block_rows:
        # Every tile (including the last) is full: fully unmasked fast path.
        _reduce_store(focal)
    else:
        last = num_tiles - 1
        i = pl.program_id(0)

        @pl.when(i != last)
        def _():
            _reduce_store(focal)

        @pl.when(i == last)
        def _():
            # Mask only the ragged last tile.  Within-block row compare, so no
            # int32 overflow regardless of total element count.  Keep select
            # semantics (jnp.where) so OOB garbage rows cannot propagate.
            row = jax.lax.broadcasted_iota(jnp.int32, (block_rows, LANE), 0)
            _reduce_store(jnp.where(row < tail_rows, focal, 0.0))


def _focal_elems(x, t, gamma, alpha):
    """Plain-JAX per-element focal BCE (used for the <128-element tail)."""
    x = x.astype(jnp.float32)
    t = t.astype(jnp.float32)
    bce = jnp.maximum(x, 0.0) - x * t + jnp.log1p(jnp.exp(-jnp.abs(x)))
    prob = jax.nn.sigmoid(x)
    pt = prob * t + (1.0 - prob) * (1.0 - t)
    return (alpha * t + (1.0 - alpha) * (1.0 - t)) * (1.0 - pt) ** gamma * bce


def focal_bce(logits, targets, gamma=2.0, alpha=0.25, reduction="mean",
              block_rows=4096):
    """Focal BCE with logits.  logits/targets: same shape, any dtype (bf16 OK;
    passing bf16 roughly halves HBM traffic for this memory-bound kernel)."""
    assert logits.shape == targets.shape
    n = int(logits.size)
    if n == 0:
        return jnp.float32(0.0)

    flat_l = logits.reshape(-1)
    flat_t = targets.reshape(-1)

    lane_rows = n // LANE            # full 128-wide rows (copy-free reshape)
    aligned = lane_rows * LANE
    tail = n - aligned               # <= 127 ragged elements

    total = jnp.float32(0.0)

    if lane_rows > 0:
        l2d = flat_l[:aligned].reshape(lane_rows, LANE)
        t2d = flat_t[:aligned].reshape(lane_rows, LANE)

        rows_r8 = _round_up(lane_rows, SUBLANE)
        # Tile height: large (amortize per-step overhead), multiple of 8, but
        # capped so medium inputs still get >= 2 grid steps (pipelining + both
        # v7x TensorCores on the single 'parallel' axis).
        br = max(SUBLANE, min(int(block_rows), rows_r8))
        br = _round_up(br, SUBLANE)
        if rows_r8 >= 2 * SUBLANE:
            br = min(br, _round_up(pl.cdiv(rows_r8, 2), SUBLANE))

        num_tiles = pl.cdiv(lane_rows, br)
        tail_rows = lane_rows - (num_tiles - 1) * br   # rows in the last tile

        kernel = functools.partial(
            _focal_bce_kernel, gamma=gamma, alpha=alpha, block_rows=br,
            tail_rows=tail_rows, num_tiles=num_tiles)

        in_spec = pl.BlockSpec((br, LANE), lambda i: (i, 0))

        partials = pl.pallas_call(
            kernel,
            out_shape=jax.ShapeDtypeStruct((num_tiles * SUBLANE, LANE),
                                           jnp.float32),
            grid_spec=pltpu.PrefetchScalarGridSpec(
                num_scalar_prefetch=0,
                grid=(num_tiles,),
                in_specs=[in_spec, in_spec],
                out_specs=pl.BlockSpec((SUBLANE, LANE), lambda i: (i, 0)),
            ),
            compiler_params=pltpu.CompilerParams(
                dimension_semantics=("parallel",),
                # Budget: 2 inputs x 2 buffers x tile + elementwise
                # intermediates.  48 MiB leaves headroom under v7x's 64 MiB
                # physical VMEM and overrides v5e/v6e default scoped limits.
                vmem_limit_bytes=48 * 1024 * 1024,
            ),
        )(l2d, t2d)

        total = jnp.sum(partials)

    if tail > 0:
        # Tiny (<128-element) ragged tail: plain-JAX epilogue instead of a
        # full-array jnp.pad copy (which would double HBM traffic).
        total = total + jnp.sum(
            _focal_elems(flat_l[aligned:], flat_t[aligned:], gamma, alpha))

    if reduction == "mean":
        return total / jnp.float32(n)
    elif reduction == "sum":
        return total
    # TODO(synk): reduction='none' (full per-element output) not implemented.
    raise NotImplementedError(f"reduction={reduction!r}")


def focal_bce_mean(logits, targets, gamma=2.0, alpha=0.25, block_rows=4096):
    return focal_bce(logits, targets, gamma, alpha, "mean", block_rows)


def focal_bce_reference(logits, targets, gamma=2.0, alpha=0.25):
    return jnp.mean(_focal_elems(logits, targets, gamma, alpha))


if __name__ == "__main__":
    key = jax.random.PRNGKey(0)
    k1, k2 = jax.random.split(key)

    # NCHW, e.g. per-pixel multi-label logits.
    logits = jax.random.normal(k1, (2, 4, 16, 16), dtype=jnp.float32) * 2.0
    targets = (jax.random.uniform(k2, (2, 4, 16, 16)) > 0.5).astype(jnp.float32)
    loss = jax.block_until_ready(focal_bce_mean(logits, targets))
    ref = focal_bce_reference(logits, targets)
    assert jnp.allclose(loss, ref, rtol=1e-5, atol=1e-6), (loss, ref)

    # Non-lane-aligned size: aligned-prefix kernel + tiny jnp tail epilogue,
    # with a masked ragged last grid tile.
    lg2 = jax.random.normal(k1, (3, 5, 7, 11), dtype=jnp.float32)
    tg2 = (jax.random.uniform(k2, (3, 5, 7, 11)) > 0.5).astype(jnp.float32)
    loss2 = jax.block_until_ready(focal_bce_mean(lg2, tg2))
    ref2 = focal_bce_reference(lg2, tg2)
    assert jnp.allclose(loss2, ref2, rtol=1e-5, atol=1e-6), (loss2, ref2)

    # bf16 inputs (recommended caller contract for HBM-bound throughput);
    # kernel upcasts in-register.
    lg3 = (jax.random.normal(k1, (2, 4, 16, 16)) * 2.0).astype(jnp.bfloat16)
    tg3 = (jax.random.uniform(k2, (2, 4, 16, 16)) > 0.5).astype(jnp.bfloat16)
    loss3 = jax.block_until_ready(focal_bce_mean(lg3, tg3))
    ref3 = focal_bce_reference(lg3, tg3)
    assert jnp.allclose(loss3, ref3, rtol=1e-4, atol=1e-5), (loss3, ref3)

    print("KERNEL_OK")
</pallas_src>

<mosaic_0001>
module attributes {stable_mosaic.version = 11 : i64} {
  func.func @_focal_bce_kernel(%arg0: i32, %arg1: memref<8x128xf32, #tpu.memory_space<vmem>>, %arg2: memref<8x128xf32, #tpu.memory_space<vmem>>, %arg3: memref<8x128xf32, #tpu.memory_space<vmem>>) attributes {dimension_semantics = [#tpu.dimension_semantics<parallel>], iteration_bounds = array<i64: 2>, scalar_prefetch = 0 : i64, scratch_operands = 0 : i64, tpu.core_type = #tpu.core_type<tc>, window_params = [{transform_indices = @transform_0, window_bounds = array<i64: 8, 128>}, {transform_indices = @transform_1, window_bounds = array<i64: 8, 128>}, {transform_indices = @transform_2, window_bounds = array<i64: 8, 128>}]} {
    %c0 = arith.constant 0 : index
    %c0_0 = arith.constant 0 : index
    %0 = vector.load %arg1[%c0, %c0_0] : memref<8x128xf32, #tpu.memory_space<vmem>>, vector<8x128xf32>
    %c0_1 = arith.constant 0 : index
    %c0_2 = arith.constant 0 : index
    %1 = vector.load %arg2[%c0_1, %c0_2] : memref<8x128xf32, #tpu.memory_space<vmem>>, vector<8x128xf32>
    %2 = math.absf %0 : vector<8x128xf32>
    %cst = arith.constant 0.000000e+00 : f32
    %3 = vector.broadcast %cst : f32 to vector<8x128xf32>
    %4 = arith.subf %3, %2 : vector<8x128xf32>
    %5 = math.exp %4 : vector<8x128xf32>
    %cst_3 = arith.constant 0.000000e+00 : f32
    %6 = vector.broadcast %cst_3 : f32 to vector<8x128xf32>
    %7 = arith.maximumf %0, %6 : vector<8x128xf32>
    %8 = arith.mulf %0, %1 : vector<8x128xf32>
    %9 = arith.subf %7, %8 : vector<8x128xf32>
    %10 = math.log1p %5 : vector<8x128xf32>
    %11 = arith.addf %9, %10 : vector<8x128xf32>
    %cst_4 = arith.constant 1.000000e+00 : f32
    %12 = vector.broadcast %cst_4 : f32 to vector<8x128xf32>
    %13 = arith.addf %12, %5 : vector<8x128xf32>
    %14 = tpu.reciprocal %13 : vector<8x128xf32> -> vector<8x128xf32>
    %cst_5 = arith.constant 0.000000e+00 : f32
    %15 = vector.broadcast %cst_5 : f32 to vector<8x128xf32>
    %16 = arith.cmpf oge, %0, %15 : vector<8x128xf32>
    %17 = arith.mulf %5, %14 : vector<8x128xf32>
    %18 = arith.select %16, %14, %17 : vector<8x128xi1>, vector<8x128xf32>
    %19 = arith.addf %18, %1 : vector<8x128xf32>
    %20 = arith.mulf %18, %1 : vector<8x128xf32>
    %cst_6 = arith.constant 2.000000e+00 : f32
    %21 = vector.broadcast %cst_6 : f32 to vector<8x128xf32>
    %22 = arith.mulf %21, %20 : vector<8x128xf32>
    %23 = arith.subf %19, %22 : vector<8x128xf32>
    %24 = arith.mulf %23, %23 : vector<8x128xf32>
    %cst_7 = arith.constant -5.000000e-01 : f32
    %25 = vector.broadcast %cst_7 : f32 to vector<8x128xf32>
    %26 = arith.mulf %25, %1 : vector<8x128xf32>
    %cst_8 = arith.constant 7.500000e-01 : f32
    %27 = vector.broadcast %cst_8 : f32 to vector<8x128xf32>
    %28 = arith.addf %27, %26 : vector<8x128xf32>
    %29 = arith.mulf %28, %24 : vector<8x128xf32>
    %30 = arith.mulf %29, %11 : vector<8x128xf32>
    %31 = vector.shape_cast %30 : vector<8x128xf32> to vector<1x8x128xf32>
    %cst_9 = arith.constant dense<0.000000e+00> : vector<8x128xf32>
    %32 = vector.multi_reduction <add>, %31, %cst_9 [0] : vector<1x8x128xf32> to vector<8x128xf32>
    %c0_10 = arith.constant 0 : index
    %c0_11 = arith.constant 0 : index
    %33 = vector.load %arg3[%c0_10, %c0_11] : memref<8x128xf32, #tpu.memory_space<vmem>>, vector<8x128xf32>
    tpu.vector_store %arg3[%c0_10, %c0_11], %32 {strides = array<i32>} : memref<8x128xf32, #tpu.memory_space<vmem>>, vector<8x128xf32>,
    return
  }
  func.func @transform_0(%arg0: i32) -> (i32, i32) {
    %c0_i32 = arith.constant 0 : i32
    %c0_i32_0 = arith.constant 0 : i32
    return %arg0, %c0_i32 : i32, i32
  }
  func.func @transform_1(%arg0: i32) -> (i32, i32) {
    %c0_i32 = arith.constant 0 : i32
    %c0_i32_0 = arith.constant 0 : i32
    return %arg0, %c0_i32 : i32, i32
  }
  func.func @transform_2(%arg0: i32) -> (i32, i32) {
    %c0_i32 = arith.constant 0 : i32
    %c0_i32_0 = arith.constant 0 : i32
    return %arg0, %c0_i32 : i32, i32
  }
}

</mosaic_0001>

<bundles_post_ra>
// kernel: tpu_custom_call.1
= control target key start
LH: loop header
LB: loop body
LE: loop exit
PB: predicated region body
PF: predicated region fallthrough
CT: control target
= control target key end

     0   :  { %7 = vsyncpa [#allocation3], 0  ;;  %s753_s0 = inlined_call_operand.hbm [shape: f32[16,128], index: 0, kind: input, shape index: {}]   ;;  %s754_s1 = inlined_call_operand.hbm [shape: f32[16,128], index: 1, kind: input, shape index: {}]   ;;  %s755_s2 = inlined_call_operand.hbm [shape: f32[16,128], index: 2, kind: output, shape index: {}]  }
   0x1   :  { %9 = vsyncpa [#allocation3 + $0x1], 0 }
   0x2   :  { %10 = vsyncpa [#allocation6], 0 }
   0x3   :  { %12 = vsyncpa [#allocation6 + $0x1], 0 }
   0x4   :  { %13 = vsyncpa [#allocation4], 0 }
   0x5   :  { %15 = vsyncpa [#allocation4 + $0x1], 0  ;;  %s554_s9 = smov 0   ;;  %s556_s10 = smov 0  }
   0x6   :  { %s558_s11 = smov 0   ;;  %s560_s12 = smov 0  }
   0x7 LB: > { %s575_s13 = sadd.s32 4294967295, %s534_s12   ;;  %s338_s14 = sadd.s32 4294967294, %s534_s12   ;;  %s534_s12 = sphi %s560_s12, %s774_s12   ;;  %s530_s11 = sphi %s558_s11, %s773_s11   ;;  %s526_s10 = sphi %s556_s10, %s772_s10   ;;  %s522_s9 = sphi %s554_s9, %s771_s9  }
   0x8   : > { %s579_s15 = sadd.s32 1, %s534_s12   ;;  %s28_s16 = sadd.s32 1, %s530_s11 }
   0x9   : > { %s25_s17 = ssub.s32 %s534_s12, %s579_s15  ;;  %p35_p0 = scmp.ne.s32.totalorder %s530_s11, %s526_s10 }
   0xa   : > { %p26_p1 = scmp.eq.s32.totalorder %s25_s17, 0  ;;  %p36_p2 = scmp.eq.s32.totalorder %s534_s12, 0 }
   0xb   : > { %p41_p3 = scmp.ne.s32.totalorder %s526_s10, %s522_s9  ;;  %p42_p4 = scmp.eq.s32.totalorder %s575_s13, 0 }
   0xc   : > { %s591_s18 = scalar_select %p26_p1, %s530_s11, %s28_s16  }
   0xd   : > { %p593_p5 = por %p36_p2, %p35_p0  ;;  %p597_p6 = por %p42_p4, %p41_p3 }
   0xe   : > { %p91_p7 = scmp.eq.s32.totalorder %s575_s13, 1  ;;  %p97_p8 = scmp.eq.s32.totalorder %s338_s14, 1 }
   0xf   : > { %s759_s20 = scalar_select %p597_p6, 1, 0 }
  0x10   : > { %p370_p10 = scmp.lt.s32.totalorder %s534_s12, 2  ;;  %p604_p11 = por %p91_p7, %p35_p0 }
  0x11   : > { %p608_p12 = por %p97_p8, %p41_p3  ;;  %s613_s23 = sand.u32 1, %s530_s11  }
  0x12   : > { %s760_s21 = scalar_select %p604_p11, 1, 0 }
  0x13   : > { %s761_s22 = scalar_select %p608_p12, 1, 0 }
  0x14   : > { %s342_s24 = sshll.u32 %s534_s12, 7  ;;  %s341_s25 = sshll.u32 %s613_s23, 3 }
  0x15   : > { %s622_s28 = scalar_lea.hbm %s753_s0, %s342_s24  ;;  %s121_s29 = scalar_lea.vmem [#allocation2], %s341_s25 }
  0x16   : > { %s128_s30 = sshll.u32 %s121_s29, 4  ;;  %p628_p13 = pnand %p370_p10, %p593_p5  ;;  %s632_s30 = int_to_ptr.vmem [resolvable:$true] %s128_s30 }
  0x17   : > { %s118_s4 = scalar_lea.sflag [#allocation3], %s613_s23  ;;  %s410_s5 = scalar_lea.hbm %s622_s28, 128 }
  0x18   : > { %p411_p2 = scmp.ne.s32.totalorder %s622_s28, %s410_s5  ;;  %p412_p3 = pneg %p628_p13 }
  0x19   : > { %s415_s8 = scalar_lea.hbm %s753_s0, 256  ;;  %p416_p5 = scmp.lt.s32.totalorder %s622_s28, %s753_s0 }
  0x1a   : > { %p413_p4 = pnand %p412_p3, %p411_p2  ;;  %p417_p8 = scmp.lt.s32.totalorder %s415_s8, %s410_s5 }
  0x1c   : > { %p414_p7 = pneg %p413_p4  ;;  %p418_p10 = por %p417_p8, %p416_p5 }
  0x1e   : > { %p419_p9 = pnand %p418_p10, %p414_p7 }
  0x20   : > { %422 = shalt.err (!%p419_p9)
}
  0x21   : > { %s423_s17 = scalar_lea.vmem %s632_s30, 128  ;;  %s536_s19 = smov [#allocation2]  }
  0x22   : > { %p424_p0 = scmp.ne.s32.totalorder %s632_s30, %s423_s17  ;;  %s428_s26 = sshll.u32 %s536_s19, 4  ;;  %s429_s26 = int_to_ptr.vmem [resolvable:$false] %s428_s26 }
  0x23   : > { %s430_s27 = scalar_lea.vmem %s429_s26, 256  ;;  %p431_p1 = scmp.lt.s32.totalorder %s632_s30, %s429_s26 }
  0x24   : > { %p426_p2 = pnand %p424_p0, %p412_p3  ;;  %p432_p12 = scmp.lt.s32.totalorder %s430_s27, %s423_s17 }
  0x26   : > { %p427_p4 = pneg %p426_p2  ;;  %p433_p11 = por %p432_p12, %p431_p1 }
  0x28   : > { %p434_p5 = pnand %p433_p11, %p427_p4 }
  0x2a   : > { %437 = shalt.err (!%p434_p5)
}
  0x2b   : > { %362 = dma.hbm_to_vmem [thread:$0]  (!%p628_p13), %s622_s28, 128, %s632_s30, %s118_s4  }
  0x2c   : > { %p763_p9 = scmp.lt.s32.totalorder %s534_s12, 3  ;;  %p764_p0 = scmp.ge.s32.totalorder %s534_s12, 1 }
  0x2d   : > { %s674_s7 = scalar_lea.hbm %s754_s1, %s342_s24  ;;  %s139_s8 = scalar_lea.vmem [#allocation5], %s341_s25 }
  0x2e   : > { %p665_p7 = pnand %p764_p0, %p763_p9  ;;  %s146_s14 = sshll.u32 %s139_s8, 4  ;;  %s147_s14 = int_to_ptr.vmem [resolvable:$true] %s146_s14 }
  0x2f   : > { %s136_s28 = scalar_lea.sflag [#allocation6], %s613_s23  ;;  %s438_s30 = scalar_lea.hbm %s674_s7, 128 }
  0x30   : > { %s765_s29 = scalar_select %p665_p7, 1, 0 }
  0x31   : > { %p439_p11 = scmp.ne.s32.totalorder %s674_s7, %s438_s30  ;;  %s443_s17 = scalar_lea.hbm %s754_s1, 256 }
  0x32   : > { %p444_p8 = scmp.lt.s32.totalorder %s674_s7, %s754_s1  ;;  %p445_p10 = scmp.lt.s32.totalorder %s443_s17, %s438_s30 }
  0x33   : > { %p441_p12 = pnand %p439_p11, %p412_p3 }
  0x34   : > { %p446_p2 = por %p445_p10, %p444_p8 }
  0x35   : > { %p442_p1 = pneg %p441_p12 }
  0x37   : > { %p447_p4 = pnand %p446_p2, %p442_p1 }
  0x39   : > { %450 = shalt.err (!%p447_p4)
}
  0x3a   : > { %s451_s25 = scalar_lea.vmem %s147_s14, 128  ;;  %s537_s23 = smov [#allocation5]  }
  0x3b   : > { %p452_p5 = scmp.ne.s32.totalorder %s147_s14, %s451_s25  ;;  %s456_s26 = sshll.u32 %s537_s23, 4  ;;  %s457_s26 = int_to_ptr.vmem [resolvable:$false] %s456_s26 }
  0x3c   : > { %s458_s27 = scalar_lea.vmem %s457_s26, 256  ;;  %p459_p11 = scmp.lt.s32.totalorder %s147_s14, %s457_s26 }
  0x3d   : > { %p454_p9 = pnand %p452_p5, %p412_p3  ;;  %p460_p12 = scmp.lt.s32.totalorder %s458_s27, %s451_s25 }
  0x3f   : > { %p455_p0 = pneg %p454_p9  ;;  %p461_p6 = por %p460_p12, %p459_p11 }
  0x41   : > { %p462_p7 = pnand %p461_p6, %p455_p0 }
  0x43   : > { %465 = shalt.err (!%p462_p7)
}
  0x44   : > { %365 = dma.hbm_to_vmem [thread:$0]  (!%p628_p13), %s674_s7, 128, %s147_s14, %s136_s28  }
  0x45   : > { %p766_p1 = scmp.ne.s32.totalorder %s765_s29, 0 }
  0x46   : > { %s700_s5 = sand.u32 (!%p766_p1), 1, %s526_s10   ;;  %p767_p6 = scmp.ne.s32.totalorder (!%p766_p1), %s759_s20, 0 }
  0x47   : > { %155 = sbr.rel (%p766_p1) target bundleno = 145 (0x91), region = 28  ;;  %s703_s6 = sshll.u32 (!%p766_p1), %s700_s5, 3 }
  0x48   : > { %s158_s8 = scalar_lea.sflag (!%p766_p1), [#allocation3], %s700_s5  ;;  %s161_s30 = scalar_lea.vmem (!%p766_p1), [#allocation2], %s703_s6 }
  0x4c   : > { %509 = dma.done.wait (%p767_p6), %s158_s8, 128  }
  0x4d   : > { %511 = vsyncadd (%p767_p6), %s158_s8, 4294967168  ;;  %s167_s3 = scalar_lea.sflag [#allocation6], %s700_s5  ;;  %s170_s29 = scalar_lea.vmem [#allocation5], %s703_s6 }
  0x4e   : > { %513 = dma.done.wait (%p767_p6), %s167_s3, 128  }
  0x4f   : > { %515 = vsyncadd (%p767_p6), %s167_s3, 4294967168  ;;  %v196_v0 = vld [vmem:[%s161_s30] sm:$0xff]  ;;  %v197_v11 = vld [vmem:[%s170_s29] sm:$0xff]  ;;  %s195_s20 = scalar_lea.vmem [#allocation7], %s703_s6  ;;  %s350_s14 = sshll.u32 %s575_s13, 7 }
  0x50   : > { %v198_v1 = vand.u32 2147483647, %v196_v0  ;;  %vm217_vm0 = vcmp.ge.f32.partialorder %v196_v0, 0.0  ;;  %v202_v13 = vmax.f32 %v196_v0, 0.0  ;;  %v203_v14 = vmul.f32 %v197_v11, %v196_v0  ;;  %s245_s7 = sshll.u32 %s195_s20, 4  ;;  %s243_s16 = scalar_lea.hbm %s755_s2, %s350_s14  ;;  %s246_s7 = int_to_ptr.vmem [resolvable:$true] %s245_s7 }
  0x51   : > { %v225_v20 = vmul.f32 -0.5, %v197_v11  ;;  %s232_s17 = scalar_lea.sflag [#allocation4], %s700_s5  ;;  %s466_s24 = scalar_lea.vmem %s246_s7, 128 }
  0x52   : > { %v199_v2 = vsub.f32 0.0, %v198_v1  ;;  %v204_v21 = vsub.f32 %v202_v13, %v203_v14  ;;  %p467_p13 = scmp.ne.s32.totalorder %s246_s7, %s466_s24  ;;  %p768_p3 = scmp.ne.s32.totalorder %s760_s21, 0 }
  0x53   : > { %v226_v25 = vadd.f32 0.75, %v225_v20  ;;  %s538_s19 = smov [#allocation7]  }
  0x54   : > { %v200_v3 = vmul.f32 1.442695, %v199_v2  ;;  %p468_p7 = pnand %p467_p13, %p768_p3  ;;  %s470_s25 = sshll.u32 %s538_s19, 4  ;;  %s471_s25 = int_to_ptr.vmem [resolvable:$false] %s470_s25 }
  0x55   : > { %s472_s23 = scalar_lea.vmem %s471_s25, 256  ;;  %p473_p10 = scmp.lt.s32.totalorder %s246_s7, %s471_s25 }
  0x56   : > { %404 = vpow2.f32 %v200_v3  ;;  %p469_p8 = pneg %p468_p7  ;;  %p474_p2 = scmp.lt.s32.totalorder %s472_s23, %s466_s24 }
  0x58   : > { %p475_p4 = por %p474_p2, %p473_p10 }
  0x5a   : > { %p476_p5 = pnand %p475_p4, %p469_p8 }
  0x63   : > { %v405_v4 = vpop.eup %404 }
  0x64   : > { %v205_v5 = vadd.f32 1.0, %v405_v4  ;;  %v208_v6 = vmul.f32 -0.5, %v405_v4  ;;  %v211_v10 = vand.u32 2147483647, %v405_v4 }
  0x66   : > { %406 = vlog2.f32 %v205_v5  ;;  %v209_v8 = vadd.f32 1.0, %v208_v6  ;;  %vm212_vm1 = vcmp.lt.f32.partialorder %v211_v10, 0.0004427343 }
  0x67   : > { %408 = vrcp.f32 %v205_v5 }
  0x68   : > { %v210_v16 = vmul.f32 %v405_v4, %v209_v8 }
  0x73   : > { %v407_v7 = vpop.eup %406 }
  0x74   : > { %v409_v9 = vpop.eup %408  ;;  %v207_v15 = vmul.f32 0.6931472, %v407_v7 }
  0x75   : > { %v218_v12 = vmul.f32 %v409_v9, %v405_v4 }
  0x76   : > { %v213_v23 = vsel %vm212_vm1, %v210_v16, %v207_v15 }
  0x77   : > { %v219_v17 = vsel %vm217_vm0, %v409_v9, %v218_v12  ;;  %v214_v26 = vadd.f32 %v213_v23, %v204_v21 }
  0x78   : > { %v220_v18 = vadd.f32 %v219_v17, %v197_v11  ;;  %v221_v19 = vmul.f32 %v219_v17, %v197_v11 }
  0x7a   : > { %v222_v22 = vmul.f32 2.0, %v221_v19 }
  0x7c   : > { %v223_v24 = vsub.f32 %v220_v18, %v222_v22 }
  0x7e   : > { %v224_v27 = vmul.f32 %v223_v24, %v223_v24 }
  0x80   : > { %v227_v28 = vmul.f32 %v226_v25, %v224_v27 }
  0x82   : > { %v228_v29 = vmul.f32 %v227_v28, %v214_v26 }
  0x84   : > { %230 = vst [vmem:[%s195_s20] sm:$0xff] %v228_v29 }
  0x85   : > { %479 = shalt.err (!%p476_p5)
}
  0x86   : > { %s480_s13 = scalar_lea.hbm %s243_s16, 128  ;;  %s484_s5 = scalar_lea.hbm %s755_s2, 256 }
  0x87   : > { %p481_p9 = scmp.ne.s32.totalorder %s243_s16, %s480_s13  ;;  %p485_p12 = scmp.lt.s32.totalorder %s243_s16, %s755_s2 }
  0x88   : > { %p486_p1 = scmp.lt.s32.totalorder %s484_s5, %s480_s13 }
  0x89   : > { %p482_p0 = pnand %p481_p9, %p768_p3 }
  0x8a   : > { %p487_p6 = por %p486_p1, %p485_p12 }
  0x8b   : > { %p483_p11 = pneg %p482_p0 }
  0x8d   : > { %p488_p13 = pnand %p487_p6, %p483_p11 }
  0x8f   : > { %491 = shalt.err (!%p488_p13)
}
  0x90   : > { %357 = dma.vmem_to_hbm [thread:$0]  (%p768_p3), %s246_s7, 128, %s243_s16, %s232_s17  }
  0x91 PF: > { %s257_s30 = sand.u32 1, %s522_s9   ;;  %p769_p7 = scmp.ne.s32.totalorder %s761_s22, 0 }
  0x92   : > { %p770_p8 = scmp.ge.s32.totalorder %s534_s12, 2  ;;  %s258_s3 = scalar_lea.sflag [#allocation4], %s257_s30 }
  0x94   : > { %p367_p10 = pnand %p770_p8, %p769_p7 }
  0x96   : > { %p368_p2 = pneg %p367_p10 }
  0x98   : > { %517 = dma.done.wait (%p368_p2), %s258_s3, 128  }
  0x99   : > { %519 = vsyncadd (%p368_p2), %s258_s3, 4294967168  ;;  %p18_p4 = scmp.ge.s32.totalorder %s579_s15, 4   ;;  %s771_s9 = smov %s526_s10 }
  0x9a   : > { %s772_s10 = smov %s530_s11  ;;  %s773_s11 = smov %s591_s18 }
  0x9b   : > { %s774_s12 = smov %s579_s15  ;;  %20 = sbr.rel (!%p18_p4) target bundleno = 7 (0x7), region = 86 }
  0xa0   :  { %263 = vsyncpa [#allocation3], 1 }
  0xa1   :  { %265 = vsyncpa [#allocation3 + $0x1], 1 }
  0xa2   :  { %266 = vsyncpa [#allocation6], 1 }
  0xa3   :  { %268 = vsyncpa [#allocation6 + $0x1], 1 }
  0xa4   :  { %269 = vsyncpa [#allocation4], 1 }
  0xa5   :  { %271 = vsyncpa [#allocation4 + $0x1], 1 }

</bundles_post_ra>
